<compile_context>
chip_gen: v7x
topology: tpu7x:2x2x1
jax: 0.10.0
libtpu: 0.0.40
codegen_flags: <defaults>
</compile_context>

<pallas_src>
import math

import jax
import jax.numpy as jnp
from jax import lax
from jax.experimental import pallas as pl
from jax.experimental.pallas import tpu as pltpu


def _round_up(n, m):
    return ((n + m - 1) // m) * m


def _pick_co_tile(c_out, max_tile=32):
    """Full dim if small, otherwise a multiple of 8 dividing c_out."""
    if c_out <= max_tile:
        return c_out
    start = max_tile - (max_tile % 8)
    for t in range(start, 7, -8):
        if c_out % t == 0:
            return t
    return c_out


def _pick_k_tile(kp, c_in, t_co, b, budget_bytes=24 * 1024 * 1024, max_tile=512):
    """Largest multiple of 128 dividing kp (<= max_tile) whose double-buffered
    x/w/out blocks fit a conservative VMEM budget (kp is a multiple of 128)."""
    best = 128
    t = 128
    while t <= min(kp, max_tile):
        if kp % t == 0:
            x_b = 2 * c_in * b * t * 4
            w_b = 2 * c_in * t_co * t * 4
            o_b = 2 * b * t_co * t * 4
            if 2 * (x_b + w_b + o_b) <= budget_bytes:
                best = t
        t += 128
    return best


def _contract_kernel(x_ref, w_ref, o_ref):
    """Diagonal complex spectral contraction for one (K-tile, C_out-tile) block.

    x_ref: (2, C_in, B,   tK) f32   plane 0 = real, plane 1 = imag
    w_ref: (2, C_in, tCo, tK) f32
    o_ref: (2, B,    tCo, tK) f32
    out[b,o,k] = sum_i x[b,i,k] * w[i,o,k]   (complex)
    """
    c_in = x_ref.shape[1]
    b = x_ref.shape[2]
    t_co = w_ref.shape[2]
    t_k = w_ref.shape[3]

    def body(i, carry):
        acc_r, acc_i = carry
        xr = x_ref[0, i, :, :]          # (B, tK)
        xi = x_ref[1, i, :, :]          # (B, tK)
        wr = w_ref[0, i, :, :]          # (tCo, tK)
        wi = w_ref[1, i, :, :]          # (tCo, tK)
        xr_b = xr[:, None, :]           # (B, 1, tK) -> broadcast over tCo sublanes
        xi_b = xi[:, None, :]
        # (a + ib)(c + id) = (ac - bd) + i(ad + bc)
        acc_r = acc_r + (xr_b * wr - xi_b * wi)
        acc_i = acc_i + (xr_b * wi + xi_b * wr)
        return acc_r, acc_i

    zeros = jnp.zeros((b, t_co, t_k), jnp.float32)
    acc_r, acc_i = lax.fori_loop(0, c_in, body, (zeros, zeros),
                                 unroll=min(c_in, 8))
    o_ref[0] = acc_r
    o_ref[1] = acc_i


def spectral_contract(x_ri, w_ri):
    """Pallas call for the per-mode complex channel contraction.

    x_ri: (2, C_in, B, Kp) f32, w_ri: (2, C_in, C_out, Kp) f32, Kp % 128 == 0.
    Returns (2, B, C_out, Kp) f32.
    """
    _, c_in, b, kp = x_ri.shape
    c_out = w_ri.shape[2]
    assert kp % 128 == 0, "K must be padded to a multiple of 128"

    t_co = _pick_co_tile(c_out)
    t_k = _pick_k_tile(kp, c_in, t_co, b)
    grid = (kp // t_k, c_out // t_co)

    # K-tile axis outer, C_out-tile axis inner: the x block's index_map ignores
    # the inner axis, so x stays resident in VMEM across the C_out sweep and
    # only the weight tile (read exactly once overall) streams from HBM.
    x_spec = pl.BlockSpec((2, c_in, b, t_k), lambda ki, ci: (0, 0, 0, ki))
    w_spec = pl.BlockSpec((2, c_in, t_co, t_k), lambda ki, ci: (0, 0, ci, ki))
    o_spec = pl.BlockSpec((2, b, t_co, t_k), lambda ki, ci: (0, 0, ci, ki))

    # VMEM budget: double-buffered blocks + headroom, capped to fit v7x (64 MiB).
    x_bytes = 2 * c_in * b * t_k * 4
    w_bytes = 2 * c_in * t_co * t_k * 4
    o_bytes = 2 * b * t_co * t_k * 4
    vmem_limit = min(56 * 1024 * 1024,
                     max(32 * 1024 * 1024,
                         2 * (x_bytes + w_bytes + o_bytes) + 4 * 1024 * 1024))

    cost = pl.CostEstimate(
        flops=8 * b * c_in * c_out * kp,            # 4 mul + 4 add per complex MAC
        transcendentals=0,
        bytes_accessed=4 * (2 * b * c_in * kp + 2 * c_in * c_out * kp
                            + 2 * b * c_out * kp),
    )

    return pl.pallas_call(
        _contract_kernel,
        out_shape=jax.ShapeDtypeStruct((2, b, c_out, kp), jnp.float32),
        grid=grid,
        in_specs=[x_spec, w_spec],
        out_specs=o_spec,
        compiler_params=pltpu.CompilerParams(
            dimension_semantics=("parallel", "parallel"),
            vmem_limit_bytes=vmem_limit),
        cost_estimate=cost,
    )(x_ri, w_ri)


class SpectralConvPallas:
    """JAX/Pallas equivalent of modulus SpectralConv with FFT transforms,
    operator_type='diagonal', separable=False, bias=False."""

    def __init__(self, nlat, nlon, in_channels, out_channels, key):
        self.nlat = nlat
        self.nlon = nlon
        self.in_channels = in_channels
        self.out_channels = out_channels
        # RealFFT2 defaults: lmax = nlat, mmax = nlon // 2 + 1
        self.modes_lat = nlat
        self.modes_lon = nlon // 2 + 1
        self.scale = math.sqrt(0.1 / float(in_channels + out_channels))

        # weight: [in_channels, out_channels, modes_lat, modes_lon], complex64
        # (torch.randn(complex64) has real/imag each with variance 1/2)
        kr, ki = jax.random.split(key)
        wshape = (in_channels, out_channels, self.modes_lat, self.modes_lon)
        inv_sqrt2 = 1.0 / math.sqrt(2.0)
        self.wr = (self.scale * inv_sqrt2) * jax.random.normal(kr, wshape, jnp.float32)
        self.wi = (self.scale * inv_sqrt2) * jax.random.normal(ki, wshape, jnp.float32)

        # Pre-packed, 128-padded weight planes for the kernel:
        # (2, C_in, C_out, Kp) with plane 0 = real, plane 1 = imag.
        self.K = self.modes_lat * self.modes_lon
        self.Kp = _round_up(self.K, 128)
        w_ri = jnp.stack([
            self.wr.reshape(in_channels, out_channels, self.K),
            self.wi.reshape(in_channels, out_channels, self.K),
        ])
        self.w_ri = jnp.pad(w_ri, ((0, 0), (0, 0), (0, 0), (0, self.Kp - self.K)))

    def __call__(self, x):
        dtype = x.dtype
        residual = x  # scale_residual is False (same fwd/inv transform sizes)
        xf = x.astype(jnp.float32)
        B, C, H, W = x.shape
        L, M = self.modes_lat, self.modes_lon
        K, Kp = self.K, self.Kp

        # TODO(synk): FFT has no clean Pallas equivalent; rfft2/irfft2 stay in XLA.
        xhat = jnp.fft.rfft2(xf, norm="ortho")[..., :L, :M]  # (B, C, L, M) complex64

        # pack real/imag planes, move C_in to a major dim, pad K to Kp (x128 lanes)
        xr = jnp.real(xhat).reshape(B, C, K)
        xi = jnp.imag(xhat).reshape(B, C, K)
        x_ri = jnp.stack([xr, xi]).transpose(0, 2, 1, 3)      # (2, C_in, B, K)
        x_ri = jnp.pad(x_ri, ((0, 0), (0, 0), (0, 0), (0, Kp - K)))

        # hot path: per-mode complex channel contraction in Pallas
        o_ri = spectral_contract(x_ri, self.w_ri)             # (2, B, C_out, Kp)
        o_ri = o_ri[..., :K]
        xp = lax.complex(o_ri[0], o_ri[1]).reshape(B, self.out_channels, L, M)

        # inverse_transform (InverseRealFFT2)
        out = jnp.fft.irfft2(xp, s=(self.nlat, self.nlon), norm="ortho")
        return out.astype(dtype), residual


def _check(B, C_in, C_out, H, W, key):
    kx, kw = jax.random.split(key)
    x = jax.random.normal(kx, (B, C_in, H, W), jnp.float32)
    conv = SpectralConvPallas(H, W, in_channels=C_in, out_channels=C_out, key=kw)
    out, residual = conv(x)
    jax.block_until_ready((out, residual))

    # plain-JAX reference for the full forward
    xhat_ref = jnp.fft.rfft2(x, norm="ortho")
    w_ref = conv.wr + 1j * conv.wi  # (C_in, C_out, L, M)
    xp_ref = jnp.einsum("bixy,ioxy->boxy", xhat_ref, w_ref)
    out_ref = jnp.fft.irfft2(xp_ref, s=(H, W), norm="ortho").astype(x.dtype)

    assert out.shape == (B, C_out, H, W)
    assert residual.shape == x.shape
    assert jnp.allclose(out, out_ref, atol=2e-5, rtol=2e-5)
    assert jnp.array_equal(residual, x)


if __name__ == "__main__":
    key = jax.random.PRNGKey(0)
    k1, k2 = jax.random.split(key)

    # primary small test (single K tile; K = 16*9 = 144 padded to 256)
    _check(B=2, C_in=4, C_out=4, H=16, W=16, key=k1)
    # second config exercising multiple K tiles + padding (K=544 -> Kp=640, tK=128)
    _check(B=2, C_in=8, C_out=8, H=32, W=32, key=k2)

    print("KERNEL_OK")
</pallas_src>

<mosaic_0001>
module attributes {stable_mosaic.version = 11 : i64} {
  func.func @_contract_kernel(%arg0: i32, %arg1: i32, %arg2: memref<2x4x2x256xf32, #tpu.memory_space<vmem>>, %arg3: memref<2x4x4x256xf32, #tpu.memory_space<vmem>>, %arg4: memref<2x2x4x256xf32, #tpu.memory_space<vmem>>) attributes {dimension_semantics = [#tpu.dimension_semantics<parallel>, #tpu.dimension_semantics<parallel>], iteration_bounds = array<i64: 1, 1>, scalar_prefetch = 0 : i64, scratch_operands = 0 : i64, tpu.core_type = #tpu.core_type<tc>, window_params = [{transform_indices = @transform_0, window_bounds = array<i64: 2, 4, 2, 256>}, {transform_indices = @transform_1, window_bounds = array<i64: 2, 4, 4, 256>}, {transform_indices = @transform_2, window_bounds = array<i64: 2, 2, 4, 256>}]} {
    %cst = arith.constant 0.000000e+00 : f32
    %0 = vector.broadcast %cst : f32 to vector<2x4x256xf32>
    %c0_i32 = arith.constant 0 : i32
    %c0 = arith.constant 0 : index
    %1 = arith.index_cast %c0_i32 : i32 to index
    %c0_0 = arith.constant 0 : index
    %c0_1 = arith.constant 0 : index
    %2 = vector.load %arg2[%c0, %1, %c0_0, %c0_1] : memref<2x4x2x256xf32, #tpu.memory_space<vmem>>, vector<1x1x2x256xf32>
    %3 = vector.shape_cast %2 : vector<1x1x2x256xf32> to vector<2x256xf32>
    %c1 = arith.constant 1 : index
    %4 = arith.index_cast %c0_i32 : i32 to index
    %c0_2 = arith.constant 0 : index
    %c0_3 = arith.constant 0 : index
    %5 = vector.load %arg2[%c1, %4, %c0_2, %c0_3] : memref<2x4x2x256xf32, #tpu.memory_space<vmem>>, vector<1x1x2x256xf32>
    %6 = vector.shape_cast %5 : vector<1x1x2x256xf32> to vector<2x256xf32>
    %c0_4 = arith.constant 0 : index
    %7 = arith.index_cast %c0_i32 : i32 to index
    %c0_5 = arith.constant 0 : index
    %c0_6 = arith.constant 0 : index
    %8 = vector.load %arg3[%c0_4, %7, %c0_5, %c0_6] : memref<2x4x4x256xf32, #tpu.memory_space<vmem>>, vector<1x1x4x256xf32>
    %9 = vector.shape_cast %8 : vector<1x1x4x256xf32> to vector<4x256xf32>
    %c1_7 = arith.constant 1 : index
    %10 = arith.index_cast %c0_i32 : i32 to index
    %c0_8 = arith.constant 0 : index
    %c0_9 = arith.constant 0 : index
    %11 = vector.load %arg3[%c1_7, %10, %c0_8, %c0_9] : memref<2x4x4x256xf32, #tpu.memory_space<vmem>>, vector<1x1x4x256xf32>
    %12 = vector.shape_cast %11 : vector<1x1x4x256xf32> to vector<4x256xf32>
    %13 = vector.shape_cast %3 : vector<2x256xf32> to vector<2x1x256xf32>
    %14 = vector.shape_cast %6 : vector<2x256xf32> to vector<2x1x256xf32>
    %15 = vector.shape_cast %9 : vector<4x256xf32> to vector<1x4x256xf32>
    %16 = vector.broadcast %13 : vector<2x1x256xf32> to vector<2x4x256xf32>
    %17 = vector.broadcast %15 : vector<1x4x256xf32> to vector<2x4x256xf32>
    %18 = arith.mulf %16, %17 : vector<2x4x256xf32>
    %19 = vector.shape_cast %12 : vector<4x256xf32> to vector<1x4x256xf32>
    %20 = vector.broadcast %14 : vector<2x1x256xf32> to vector<2x4x256xf32>
    %21 = vector.broadcast %19 : vector<1x4x256xf32> to vector<2x4x256xf32>
    %22 = arith.mulf %20, %21 : vector<2x4x256xf32>
    %23 = arith.subf %18, %22 : vector<2x4x256xf32>
    %24 = arith.addf %0, %23 : vector<2x4x256xf32>
    %25 = vector.shape_cast %12 : vector<4x256xf32> to vector<1x4x256xf32>
    %26 = vector.broadcast %13 : vector<2x1x256xf32> to vector<2x4x256xf32>
    %27 = vector.broadcast %25 : vector<1x4x256xf32> to vector<2x4x256xf32>
    %28 = arith.mulf %26, %27 : vector<2x4x256xf32>
    %29 = vector.shape_cast %9 : vector<4x256xf32> to vector<1x4x256xf32>
    %30 = vector.broadcast %14 : vector<2x1x256xf32> to vector<2x4x256xf32>
    %31 = vector.broadcast %29 : vector<1x4x256xf32> to vector<2x4x256xf32>
    %32 = arith.mulf %30, %31 : vector<2x4x256xf32>
    %33 = arith.addf %28, %32 : vector<2x4x256xf32>
    %34 = arith.addf %0, %33 : vector<2x4x256xf32>
    %c1_i32 = arith.constant 1 : i32
    %c0_10 = arith.constant 0 : index
    %35 = arith.index_cast %c1_i32 : i32 to index
    %c0_11 = arith.constant 0 : index
    %c0_12 = arith.constant 0 : index
    %36 = vector.load %arg2[%c0_10, %35, %c0_11, %c0_12] : memref<2x4x2x256xf32, #tpu.memory_space<vmem>>, vector<1x1x2x256xf32>
    %37 = vector.shape_cast %36 : vector<1x1x2x256xf32> to vector<2x256xf32>
    %c1_13 = arith.constant 1 : index
    %38 = arith.index_cast %c1_i32 : i32 to index
    %c0_14 = arith.constant 0 : index
    %c0_15 = arith.constant 0 : index
    %39 = vector.load %arg2[%c1_13, %38, %c0_14, %c0_15] : memref<2x4x2x256xf32, #tpu.memory_space<vmem>>, vector<1x1x2x256xf32>
    %40 = vector.shape_cast %39 : vector<1x1x2x256xf32> to vector<2x256xf32>
    %c0_16 = arith.constant 0 : index
    %41 = arith.index_cast %c1_i32 : i32 to index
    %c0_17 = arith.constant 0 : index
    %c0_18 = arith.constant 0 : index
    %42 = vector.load %arg3[%c0_16, %41, %c0_17, %c0_18] : memref<2x4x4x256xf32, #tpu.memory_space<vmem>>, vector<1x1x4x256xf32>
    %43 = vector.shape_cast %42 : vector<1x1x4x256xf32> to vector<4x256xf32>
    %c1_19 = arith.constant 1 : index
    %44 = arith.index_cast %c1_i32 : i32 to index
    %c0_20 = arith.constant 0 : index
    %c0_21 = arith.constant 0 : index
    %45 = vector.load %arg3[%c1_19, %44, %c0_20, %c0_21] : memref<2x4x4x256xf32, #tpu.memory_space<vmem>>, vector<1x1x4x256xf32>
    %46 = vector.shape_cast %45 : vector<1x1x4x256xf32> to vector<4x256xf32>
    %47 = vector.shape_cast %37 : vector<2x256xf32> to vector<2x1x256xf32>
    %48 = vector.shape_cast %40 : vector<2x256xf32> to vector<2x1x256xf32>
    %49 = vector.shape_cast %43 : vector<4x256xf32> to vector<1x4x256xf32>
    %50 = vector.broadcast %47 : vector<2x1x256xf32> to vector<2x4x256xf32>
    %51 = vector.broadcast %49 : vector<1x4x256xf32> to vector<2x4x256xf32>
    %52 = arith.mulf %50, %51 : vector<2x4x256xf32>
    %53 = vector.shape_cast %46 : vector<4x256xf32> to vector<1x4x256xf32>
    %54 = vector.broadcast %48 : vector<2x1x256xf32> to vector<2x4x256xf32>
    %55 = vector.broadcast %53 : vector<1x4x256xf32> to vector<2x4x256xf32>
    %56 = arith.mulf %54, %55 : vector<2x4x256xf32>
    %57 = arith.subf %52, %56 : vector<2x4x256xf32>
    %58 = arith.addf %24, %57 : vector<2x4x256xf32>
    %59 = vector.shape_cast %46 : vector<4x256xf32> to vector<1x4x256xf32>
    %60 = vector.broadcast %47 : vector<2x1x256xf32> to vector<2x4x256xf32>
    %61 = vector.broadcast %59 : vector<1x4x256xf32> to vector<2x4x256xf32>
    %62 = arith.mulf %60, %61 : vector<2x4x256xf32>
    %63 = vector.shape_cast %43 : vector<4x256xf32> to vector<1x4x256xf32>
    %64 = vector.broadcast %48 : vector<2x1x256xf32> to vector<2x4x256xf32>
    %65 = vector.broadcast %63 : vector<1x4x256xf32> to vector<2x4x256xf32>
    %66 = arith.mulf %64, %65 : vector<2x4x256xf32>
    %67 = arith.addf %62, %66 : vector<2x4x256xf32>
    %68 = arith.addf %34, %67 : vector<2x4x256xf32>
    %c2_i32 = arith.constant 2 : i32
    %c0_22 = arith.constant 0 : index
    %69 = arith.index_cast %c2_i32 : i32 to index
    %c0_23 = arith.constant 0 : index
    %c0_24 = arith.constant 0 : index
    %70 = vector.load %arg2[%c0_22, %69, %c0_23, %c0_24] : memref<2x4x2x256xf32, #tpu.memory_space<vmem>>, vector<1x1x2x256xf32>
    %71 = vector.shape_cast %70 : vector<1x1x2x256xf32> to vector<2x256xf32>
    %c1_25 = arith.constant 1 : index
    %72 = arith.index_cast %c2_i32 : i32 to index
    %c0_26 = arith.constant 0 : index
    %c0_27 = arith.constant 0 : index
    %73 = vector.load %arg2[%c1_25, %72, %c0_26, %c0_27] : memref<2x4x2x256xf32, #tpu.memory_space<vmem>>, vector<1x1x2x256xf32>
    %74 = vector.shape_cast %73 : vector<1x1x2x256xf32> to vector<2x256xf32>
    %c0_28 = arith.constant 0 : index
    %75 = arith.index_cast %c2_i32 : i32 to index
    %c0_29 = arith.constant 0 : index
    %c0_30 = arith.constant 0 : index
    %76 = vector.load %arg3[%c0_28, %75, %c0_29, %c0_30] : memref<2x4x4x256xf32, #tpu.memory_space<vmem>>, vector<1x1x4x256xf32>
    %77 = vector.shape_cast %76 : vector<1x1x4x256xf32> to vector<4x256xf32>
    %c1_31 = arith.constant 1 : index
    %78 = arith.index_cast %c2_i32 : i32 to index
    %c0_32 = arith.constant 0 : index
    %c0_33 = arith.constant 0 : index
    %79 = vector.load %arg3[%c1_31, %78, %c0_32, %c0_33] : memref<2x4x4x256xf32, #tpu.memory_space<vmem>>, vector<1x1x4x256xf32>
    %80 = vector.shape_cast %79 : vector<1x1x4x256xf32> to vector<4x256xf32>
    %81 = vector.shape_cast %71 : vector<2x256xf32> to vector<2x1x256xf32>
    %82 = vector.shape_cast %74 : vector<2x256xf32> to vector<2x1x256xf32>
    %83 = vector.shape_cast %77 : vector<4x256xf32> to vector<1x4x256xf32>
    %84 = vector.broadcast %81 : vector<2x1x256xf32> to vector<2x4x256xf32>
    %85 = vector.broadcast %83 : vector<1x4x256xf32> to vector<2x4x256xf32>
    %86 = arith.mulf %84, %85 : vector<2x4x256xf32>
    %87 = vector.shape_cast %80 : vector<4x256xf32> to vector<1x4x256xf32>
    %88 = vector.broadcast %82 : vector<2x1x256xf32> to vector<2x4x256xf32>
    %89 = vector.broadcast %87 : vector<1x4x256xf32> to vector<2x4x256xf32>
    %90 = arith.mulf %88, %89 : vector<2x4x256xf32>
    %91 = arith.subf %86, %90 : vector<2x4x256xf32>
    %92 = arith.addf %58, %91 : vector<2x4x256xf32>
    %93 = vector.shape_cast %80 : vector<4x256xf32> to vector<1x4x256xf32>
    %94 = vector.broadcast %81 : vector<2x1x256xf32> to vector<2x4x256xf32>
    %95 = vector.broadcast %93 : vector<1x4x256xf32> to vector<2x4x256xf32>
    %96 = arith.mulf %94, %95 : vector<2x4x256xf32>
    %97 = vector.shape_cast %77 : vector<4x256xf32> to vector<1x4x256xf32>
    %98 = vector.broadcast %82 : vector<2x1x256xf32> to vector<2x4x256xf32>
    %99 = vector.broadcast %97 : vector<1x4x256xf32> to vector<2x4x256xf32>
    %100 = arith.mulf %98, %99 : vector<2x4x256xf32>
    %101 = arith.addf %96, %100 : vector<2x4x256xf32>
    %102 = arith.addf %68, %101 : vector<2x4x256xf32>
    %c3_i32 = arith.constant 3 : i32
    %c0_34 = arith.constant 0 : index
    %103 = arith.index_cast %c3_i32 : i32 to index
    %c0_35 = arith.constant 0 : index
    %c0_36 = arith.constant 0 : index
    %104 = vector.load %arg2[%c0_34, %103, %c0_35, %c0_36] : memref<2x4x2x256xf32, #tpu.memory_space<vmem>>, vector<1x1x2x256xf32>
    %105 = vector.shape_cast %104 : vector<1x1x2x256xf32> to vector<2x256xf32>
    %c1_37 = arith.constant 1 : index
    %106 = arith.index_cast %c3_i32 : i32 to index
    %c0_38 = arith.constant 0 : index
    %c0_39 = arith.constant 0 : index
    %107 = vector.load %arg2[%c1_37, %106, %c0_38, %c0_39] : memref<2x4x2x256xf32, #tpu.memory_space<vmem>>, vector<1x1x2x256xf32>
    %108 = vector.shape_cast %107 : vector<1x1x2x256xf32> to vector<2x256xf32>
    %c0_40 = arith.constant 0 : index
    %109 = arith.index_cast %c3_i32 : i32 to index
    %c0_41 = arith.constant 0 : index
    %c0_42 = arith.constant 0 : index
    %110 = vector.load %arg3[%c0_40, %109, %c0_41, %c0_42] : memref<2x4x4x256xf32, #tpu.memory_space<vmem>>, vector<1x1x4x256xf32>
    %111 = vector.shape_cast %110 : vector<1x1x4x256xf32> to vector<4x256xf32>
    %c1_43 = arith.constant 1 : index
    %112 = arith.index_cast %c3_i32 : i32 to index
    %c0_44 = arith.constant 0 : index
    %c0_45 = arith.constant 0 : index
    %113 = vector.load %arg3[%c1_43, %112, %c0_44, %c0_45] : memref<2x4x4x256xf32, #tpu.memory_space<vmem>>, vector<1x1x4x256xf32>
    %114 = vector.shape_cast %113 : vector<1x1x4x256xf32> to vector<4x256xf32>
    %115 = vector.shape_cast %105 : vector<2x256xf32> to vector<2x1x256xf32>
    %116 = vector.shape_cast %108 : vector<2x256xf32> to vector<2x1x256xf32>
    %117 = vector.shape_cast %111 : vector<4x256xf32> to vector<1x4x256xf32>
    %118 = vector.broadcast %115 : vector<2x1x256xf32> to vector<2x4x256xf32>
    %119 = vector.broadcast %117 : vector<1x4x256xf32> to vector<2x4x256xf32>
    %120 = arith.mulf %118, %119 : vector<2x4x256xf32>
    %121 = vector.shape_cast %114 : vector<4x256xf32> to vector<1x4x256xf32>
    %122 = vector.broadcast %116 : vector<2x1x256xf32> to vector<2x4x256xf32>
    %123 = vector.broadcast %121 : vector<1x4x256xf32> to vector<2x4x256xf32>
    %124 = arith.mulf %122, %123 : vector<2x4x256xf32>
    %125 = arith.subf %120, %124 : vector<2x4x256xf32>
    %126 = arith.addf %92, %125 : vector<2x4x256xf32>
    %127 = vector.shape_cast %114 : vector<4x256xf32> to vector<1x4x256xf32>
    %128 = vector.broadcast %115 : vector<2x1x256xf32> to vector<2x4x256xf32>
    %129 = vector.broadcast %127 : vector<1x4x256xf32> to vector<2x4x256xf32>
    %130 = arith.mulf %128, %129 : vector<2x4x256xf32>
    %131 = vector.shape_cast %111 : vector<4x256xf32> to vector<1x4x256xf32>
    %132 = vector.broadcast %116 : vector<2x1x256xf32> to vector<2x4x256xf32>
    %133 = vector.broadcast %131 : vector<1x4x256xf32> to vector<2x4x256xf32>
    %134 = arith.mulf %132, %133 : vector<2x4x256xf32>
    %135 = arith.addf %130, %134 : vector<2x4x256xf32>
    %136 = arith.addf %102, %135 : vector<2x4x256xf32>
    %c4_i32 = arith.constant 4 : i32
    %c0_46 = arith.constant 0 : index
    %c0_47 = arith.constant 0 : index
    %c0_48 = arith.constant 0 : index
    %c0_49 = arith.constant 0 : index
    %137 = vector.load %arg4[%c0_46, %c0_47, %c0_48, %c0_49] : memref<2x2x4x256xf32, #tpu.memory_space<vmem>>, vector<1x2x4x256xf32>
    %138 = vector.shape_cast %137 : vector<1x2x4x256xf32> to vector<2x4x256xf32>
    %139 = vector.shape_cast %126 : vector<2x4x256xf32> to vector<1x2x4x256xf32>
    tpu.vector_store %arg4[%c0_46, %c0_47, %c0_48, %c0_49], %139 {strides = array<i32>} : memref<2x2x4x256xf32, #tpu.memory_space<vmem>>, vector<1x2x4x256xf32>,
    %c1_50 = arith.constant 1 : index
    %c0_51 = arith.constant 0 : index
    %c0_52 = arith.constant 0 : index
    %c0_53 = arith.constant 0 : index
    %140 = vector.load %arg4[%c1_50, %c0_51, %c0_52, %c0_53] : memref<2x2x4x256xf32, #tpu.memory_space<vmem>>, vector<1x2x4x256xf32>
    %141 = vector.shape_cast %140 : vector<1x2x4x256xf32> to vector<2x4x256xf32>
    %142 = vector.shape_cast %136 : vector<2x4x256xf32> to vector<1x2x4x256xf32>
    tpu.vector_store %arg4[%c1_50, %c0_51, %c0_52, %c0_53], %142 {strides = array<i32>} : memref<2x2x4x256xf32, #tpu.memory_space<vmem>>, vector<1x2x4x256xf32>,
    return
  }
  func.func @transform_0(%arg0: i32, %arg1: i32) -> (i32, i32, i32, i32) {
    %c0_i32 = arith.constant 0 : i32
    %c0_i32_0 = arith.constant 0 : i32
    %c0_i32_1 = arith.constant 0 : i32
    %c0_i32_2 = arith.constant 0 : i32
    return %c0_i32, %c0_i32_0, %c0_i32_1, %arg0 : i32, i32, i32, i32
  }
  func.func @transform_1(%arg0: i32, %arg1: i32) -> (i32, i32, i32, i32) {
    %c0_i32 = arith.constant 0 : i32
    %c0_i32_0 = arith.constant 0 : i32
    %c0_i32_1 = arith.constant 0 : i32
    return %c0_i32, %c0_i32_0, %arg1, %arg0 : i32, i32, i32, i32
  }
  func.func @transform_2(%arg0: i32, %arg1: i32) -> (i32, i32, i32, i32) {
    %c0_i32 = arith.constant 0 : i32
    %c0_i32_0 = arith.constant 0 : i32
    %c0_i32_1 = arith.constant 0 : i32
    return %c0_i32, %c0_i32_0, %arg1, %arg0 : i32, i32, i32, i32
  }
}

</mosaic_0001>

<bundles_post_ra>
// kernel: tpu_custom_call.1
= control target key start
LH: loop header
LB: loop body
LE: loop exit
PB: predicated region body
PF: predicated region fallthrough
CT: control target
= control target key end

     0   :  { %7 = vsyncpa [#allocation3], 0  ;;  %s930_s0 = inlined_call_operand.hbm [shape: f32[2,4,2,256], index: 0, kind: input, shape index: {}]   ;;  %s931_s1 = inlined_call_operand.hbm [shape: f32[2,4,4,256], index: 1, kind: input, shape index: {}]   ;;  %s932_s2 = inlined_call_operand.hbm [shape: f32[2,2,4,256], index: 2, kind: output, shape index: {}]  }
   0x1   :  { %8 = vsyncpa [#allocation6], 0 }
   0x2   :  { %9 = vsyncpa [#allocation4], 0  ;;  %s588_s9 = smov [#allocation2]   ;;  %s516_s13 = scalar_lea.hbm %s930_s0, 512 }
   0x3   :  { %s15_s10 = sshll.u32 %s588_s9, 4  ;;  %p517_p0 = scmp.ne.s32.totalorder %s930_s0, %s516_s13  ;;  %s16_s10 = int_to_ptr.vmem [resolvable:$true] %s15_s10 }
   0x4   :  { %p520_p1 = scmp.lt.u32.totalorder %s516_s13, %s930_s0 }
   0x6   :  { %p522_p2 = pnand %p520_p1, %p517_p0 }
   0x8   :  { %525 = shalt.err (!%p522_p2)
}
   0x9   :  { %s526_s18 = scalar_lea.vmem %s16_s10, 512  ;;  %p531_p4 = scmp.lt.s32.totalorder %s16_s10, %s16_s10 }
   0xa   :  { %p527_p3 = scmp.ne.s32.totalorder %s16_s10, %s526_s18  ;;  %p532_p5 = scmp.lt.s32.totalorder %s526_s18, %s526_s18 }
   0xc   :  { %p533_p6 = por %p532_p5, %p531_p4 }
   0xe   :  { %p534_p7 = pnand %p533_p6, %p527_p3 }
  0x10   :  { %537 = shalt.err (!%p534_p7)
}
  0x11   :  { %s589_s19 = smov 64   ;;  %s590_s20 = smov 4  }
  0x12   :  { %21 = dma.hbm_to_vmem [thread:$0]  %s930_s0, 512, %s16_s10, [#allocation3], %s589_s19, %s589_s19, %s590_s20  }
  0x13   :  { %s591_s23 = smov [#allocation5]   ;;  %s538_s27 = scalar_lea.hbm %s931_s1, 1024 }
  0x14   :  { %s27_s24 = sshll.u32 %s591_s23, 4  ;;  %p539_p8 = scmp.ne.s32.totalorder %s931_s1, %s538_s27  ;;  %s28_s24 = int_to_ptr.vmem [resolvable:$true] %s27_s24 }
  0x15   :  { %p542_p9 = scmp.lt.u32.totalorder %s538_s27, %s931_s1 }
  0x17   :  { %p544_p10 = pnand %p542_p9, %p539_p8 }
  0x19   :  { %547 = shalt.err (!%p544_p10)
}
  0x1a   :  { %s548_s4 = scalar_lea.vmem %s28_s24, 1024  ;;  %p553_p12 = scmp.lt.s32.totalorder %s28_s24, %s28_s24 }
  0x1b   :  { %p549_p11 = scmp.ne.s32.totalorder %s28_s24, %s548_s4  ;;  %p554_p13 = scmp.lt.s32.totalorder %s548_s4, %s548_s4 }
  0x1d   :  { %p555_p0 = por %p554_p13, %p553_p12 }
  0x1f   :  { %p556_p1 = pnand %p555_p0, %p549_p11 }
  0x21   :  { %559 = shalt.err (!%p556_p1)
}
  0x22   :  { %s592_s0 = smov 128   ;;  %s593_s5 = smov 8  }
  0x23   :  { %33 = dma.hbm_to_vmem [thread:$0]  %s931_s1, 1024, %s28_s24, [#allocation6], %s592_s0, %s592_s0, %s593_s5  }
  0x24   :  { %582 = dma.done.wait [#allocation3], 512  }
  0x25   :  { %583 = vsyncadd [#allocation3], 4294966784 }
  0x26   :  { %584 = dma.done.wait [#allocation6], 1024  }
  0x27   :  { %585 = vsyncadd [#allocation6], 4294966272  ;;  %v64_v0 = vlaneseq  ;;  %v493_v4 = vld.sshfl [vmem:[#allocation2] sm:$0x33 pattern:$0x75316420] }
  0x28   :  { %v641_v5 = vld [vmem:[#allocation5] sm:$0xff]  ;;  %v494_v7 = vld.sshfl [vmem:[#allocation2 + $0x10] sm:$0x33 pattern:$0x75316420]  ;;  %v659_v12 = vld [vmem:[#allocation5 + $0x8] sm:$0xff] }
  0x29   :  { %v65_v1 = vshrl.u32 %v64_v0, 7  ;;  %v643_v6 = vld [vmem:[#allocation5 + $0x20] sm:$0xff]  ;;  %v653_v10 = vcombine.high %v641_v5, %v641_v5  ;;  %v661_v13 = vld [vmem:[#allocation5 + $0x28] sm:$0xff]  ;;  %v671_v17 = vcombine.high %v659_v12, %v659_v12  ;;  %v699_v29 = vld [vmem:[#allocation5 + $0x10] sm:$0xff]  ;;  %s594_s1 = smov [#allocation7]  }
  0x2a   :  { %v657_v11 = vcombine.high %v643_v6, %v643_v6  ;;  %v495_v16 = vld.sshfl [vmem:[#allocation2 + $0x4] sm:$0x33 pattern:$0x75316420]  ;;  %v675_v18 = vcombine.high %v661_v13, %v661_v13  ;;  %v705_v32 = vld [vmem:[#allocation5 + $0x30] sm:$0xff]  ;;  %v719_v40 = vld [vmem:[#allocation5 + $0x18] sm:$0xff]  ;;  %v723_v41 = vcombine.high %v699_v29, %v699_v29 }
  0x2b   :  { %v637_v2 = vsub.s32 0, %v65_v1  ;;  %v639_v3 = vsub.s32 1, %v65_v1  ;;  %v496_v21 = vld.sshfl [vmem:[#allocation2 + $0x14] sm:$0x33 pattern:$0x75316420]  ;;  %v735_v48 = vcombine.high %v705_v32, %v705_v32  ;;  %v751_v54 = vcombine.high %v719_v40, %v719_v40 }
  0x2c   :  { %v697_v28 = vld.sshfl [vmem:[#allocation2 + $0x8] sm:$0x33 pattern:$0x75316420]  ;;  %v744_v52 = vld [vmem:[#allocation5 + $0x38] sm:$0xff]  ;;  %s480_s8 = sshll.u32 %s594_s1, 4  ;;  %s481_s8 = int_to_ptr.vmem [resolvable:$true] %s480_s8 }
  0x2d   :  { %v646_v8 = vrot.slane %v493_v4, %v637_v2  ;;  %v649_v9 = vrot.slane %v493_v4, %v639_v3  ;;  %v664_v14 = vrot.slane %v494_v7, %v637_v2  ;;  %v667_v15 = vrot.slane %v494_v7, %v639_v3  ;;  %v498_v39 = vld.sshfl [vmem:[#allocation2 + $0x18] sm:$0x33 pattern:$0x75316420]  ;;  %s560_s9 = scalar_lea.vmem %s481_s8, 512  ;;  %p565_p3 = scmp.lt.s32.totalorder %s481_s8, %s481_s8 }
  0x2e   :  { %v682_v22 = vrot.slane %v495_v16, %v637_v2  ;;  %v685_v23 = vrot.slane %v495_v16, %v639_v3  ;;  %v692_v26 = vrot.slane %v496_v21, %v637_v2  ;;  %v695_v27 = vrot.slane %v496_v21, %v639_v3  ;;  %v499_v45 = vld.sshfl [vmem:[#allocation2 + $0xc] sm:$0x33 pattern:$0x75316420]  ;;  %p561_p2 = scmp.ne.s32.totalorder %s481_s8, %s560_s9  ;;  %p566_p4 = scmp.lt.s32.totalorder %s560_s9, %s560_s9 }
  0x2f   :  { %v87_v19 = vmul.f32 %v646_v8, %v641_v5  ;;  %v88_v20 = vmul.f32 %v653_v10, %v649_v9  ;;  %v114_v24 = vmul.f32 %v664_v14, %v643_v6  ;;  %v115_v25 = vmul.f32 %v657_v11, %v667_v15  ;;  %v500_v58 = vld.sshfl [vmem:[#allocation2 + $0x1c] sm:$0x33 pattern:$0x75316420] }
  0x30   :  { %v191_v30 = vmul.f32 %v682_v22, %v659_v12  ;;  %v192_v31 = vmul.f32 %v671_v17, %v685_v23  ;;  %v709_v33 = vrot.slane %v697_v28, %v637_v2  ;;  %v713_v34 = vrot.slane %v697_v28, %v639_v3  ;;  %p567_p5 = por %p566_p4, %p565_p3 }
  0x31   :  { %v118_v35 = vsub.f32 %v87_v19, %v114_v24  ;;  %v119_v36 = vsub.f32 %v88_v20, %v115_v25  ;;  %v218_v37 = vmul.f32 %v692_v26, %v661_v13  ;;  %v219_v38 = vmul.f32 %v675_v18, %v695_v27 }
  0x32   :  { %v295_v42 = vmul.f32 %v709_v33, %v699_v29  ;;  %v728_v43 = vrot.slane %v498_v39, %v637_v2  ;;  %v731_v44 = vrot.slane %v498_v39, %v639_v3  ;;  %v738_v49 = vrot.slane %v499_v45, %v637_v2  ;;  %p568_p6 = pnand %p567_p5, %p561_p2 }
  0x33   :  { %v222_v46 = vsub.f32 %v191_v30, %v218_v37  ;;  %v223_v47 = vsub.f32 %v192_v31, %v219_v38  ;;  %v296_v50 = vmul.f32 %v723_v41, %v713_v34  ;;  %v747_v53 = vrot.slane %v499_v45, %v639_v3 }
  0x34   :  { %v322_v51 = vmul.f32 %v728_v43, %v705_v32  ;;  %v323_v57 = vmul.f32 %v735_v48, %v731_v44  ;;  %v399_v59 = vmul.f32 %v738_v49, %v719_v40  ;;  %v760_v62 = vrot.slane %v500_v58, %v637_v2 }
  0x35   :  { %v226_v55 = vadd.f32 %v222_v46, %v118_v35  ;;  %v227_v56 = vadd.f32 %v223_v47, %v119_v36  ;;  %v400_v61 = vmul.f32 %v751_v54, %v747_v53  ;;  %v763_v63 = vrot.slane %v500_v58, %v639_v3 }
  0x36   :  { %v326_v60 = vsub.f32 %v295_v42, %v322_v51  ;;  %v327_v0 = vsub.f32 %v296_v50, %v323_v57  ;;  %v767_v1 = vcombine.high %v744_v52, %v744_v52  ;;  %v54_v19 = vcombine.high %v493_v4, %v493_v4 }
  0x37   :  { %v63_v20 = vcombine.high %v494_v7, %v494_v7  ;;  %v426_v25 = vmul.f32 %v760_v62, %v744_v52  ;;  %v158_v30 = vcombine.high %v495_v16, %v495_v16  ;;  %v167_v31 = vcombine.high %v496_v21, %v496_v21 }
  0x38   :  { %v330_v24 = vadd.f32 %v326_v60, %v226_v55  ;;  %v331_v35 = vadd.f32 %v327_v0, %v227_v56  ;;  %v427_v36 = vmul.f32 %v767_v1, %v763_v63  ;;  %v774_v37 = vrot.slane %v54_v19, %v637_v2 }
  0x39   :  { %v777_v38 = vrot.slane %v54_v19, %v639_v3  ;;  %v430_v42 = vsub.f32 %v399_v59, %v426_v25  ;;  %v780_v4 = vrot.slane %v63_v20, %v637_v2  ;;  %v783_v7 = vrot.slane %v63_v20, %v639_v3 }
  0x3a   :  { %v786_v16 = vrot.slane %v158_v30, %v637_v2  ;;  %v431_v21 = vsub.f32 %v400_v61, %v427_v36  ;;  %v89_v46 = vmul.f32 %v774_v37, %v641_v5  ;;  %v793_v50 = vrot.slane %v158_v30, %v639_v3 }
  0x3b   :  { %v90_v47 = vmul.f32 %v653_v10, %v777_v38  ;;  %v434_v51 = vadd.f32 %v430_v42, %v330_v24  ;;  %v116_v55 = vmul.f32 %v780_v4, %v643_v6  ;;  %v117_v56 = vmul.f32 %v657_v11, %v783_v7 }
  0x3c   :  { %v193_v57 = vmul.f32 %v786_v16, %v659_v12  ;;  %v435_v59 = vadd.f32 %v431_v21, %v331_v35  ;;  %v194_v60 = vmul.f32 %v671_v17, %v793_v50  ;;  %v804_v61 = vrot.slane %v167_v31, %v637_v2 }
  0x3d   :  { %v807_v0 = vrot.slane %v167_v31, %v639_v3  ;;  %v120_v19 = vsub.f32 %v89_v46, %v116_v55  ;;  %v121_v20 = vsub.f32 %v90_v47, %v117_v56  ;;  %v262_v24 = vcombine.high %v697_v28, %v697_v28 }
  0x3e   :  { %v271_v25 = vcombine.high %v498_v39, %v498_v39  ;;  %v458_v30 = vcombine.low %v434_v51, %v435_v59  ;;  %v220_v36 = vmul.f32 %v804_v61, %v661_v13  ;;  %v366_v42 = vcombine.high %v499_v45, %v499_v45 }
  0x3f   :  { %v221_v35 = vmul.f32 %v675_v18, %v807_v0  ;;  %v816_v21 = vrot.slane %v262_v24, %v637_v2  ;;  %v819_v31 = vrot.slane %v262_v24, %v639_v3  ;;  %v375_v51 = vcombine.high %v500_v58, %v500_v58 }
  0x40   :  { %v822_v46 = vrot.slane %v271_v25, %v637_v2  ;;  %v825_v28 = vrot.slane %v271_v25, %v639_v3  ;;  %462 = vst [vmem:[#allocation7] sm:$0xff] %v458_v30  ;;  %v224_v39 = vsub.f32 %v193_v57, %v220_v36  ;;  %v828_v55 = vrot.slane %v366_v42, %v637_v2 }
  0x41   :  { %935 = vst [vmem:[#allocation11_spill] sm:$0xff] %v819_v31  ;;  %v225_v47 = vsub.f32 %v194_v60, %v221_v35  ;;  %v297_v45 = vmul.f32 %v816_v21, %v699_v29  ;;  %v298_v56 = vmul.f32 %v723_v41, %v819_v31  ;;  %v839_v57 = vrot.slane %v366_v42, %v639_v3 }
  0x42   :  { %936 = vst [vmem:[#allocation12_spill] sm:$0xff] %v822_v46  ;;  %v324_v59 = vmul.f32 %v822_v46, %v705_v32  ;;  %v325_v24 = vmul.f32 %v735_v48, %v825_v28  ;;  %v228_v25 = vadd.f32 %v224_v39, %v120_v19  ;;  %v401_v58 = vmul.f32 %v828_v55, %v719_v40 }
  0x43   :  { %v229_v30 = vadd.f32 %v225_v47, %v121_v20  ;;  %v414_v35 = vrot.slane %v375_v51, %v637_v2  ;;  %v845_v31 = vrot.slane %v375_v51, %v639_v3  ;;  %v402_v46 = vmul.f32 %v751_v54, %v839_v57 }
  0x44   :  { %v328_v60 = vsub.f32 %v297_v45, %v324_v59  ;;  %v329_v36 = vsub.f32 %v298_v56, %v325_v24  ;;  %v126_v19 = vmul.f32 %v646_v8, %v643_v6  ;;  %v127_v20 = vmul.f32 %v657_v11, %v649_v9 }
  0x45   :  { %v130_v42 = vmul.f32 %v664_v14, %v641_v5  ;;  %v428_v45 = vmul.f32 %v414_v35, %v744_v52  ;;  %v429_v2 = vmul.f32 %v767_v1, %v845_v31  ;;  %v131_v3 = vmul.f32 %v667_v15, %v653_v10 }
  0x46   :  { %v332_v39 = vadd.f32 %v328_v60, %v228_v25  ;;  %v333_v47 = vadd.f32 %v329_v36, %v229_v30  ;;  %v230_v8 = vmul.f32 %v682_v22, %v661_v13  ;;  %v231_v9 = vmul.f32 %v675_v18, %v685_v23 }
  0x47   :  { %v134_v51 = vadd.f32 %v130_v42, %v126_v19  ;;  %v432_v56 = vsub.f32 %v401_v58, %v428_v45  ;;  %v433_v59 = vsub.f32 %v402_v46, %v429_v2  ;;  %v234_v14 = vmul.f32 %v692_v26, %v659_v12 }
  0x48   :  { %v235_v24 = vmul.f32 %v695_v27, %v671_v17  ;;  %v135_v25 = vadd.f32 %v131_v3, %v127_v20  ;;  %v334_v30 = vmul.f32 %v709_v33, %v705_v32  ;;  %v335_v15 = vmul.f32 %v735_v48, %v713_v34 }
  0x49   :  { %v338_v22 = vmul.f32 %v728_v43, %v699_v29  ;;  %v436_v60 = vadd.f32 %v432_v56, %v332_v39  ;;  %v437_v23 = vadd.f32 %v433_v59, %v333_v47  ;;  %v238_v58 = vadd.f32 %v234_v14, %v230_v8 }
  0x4a   :  { %v239_v46 = vadd.f32 %v235_v24, %v231_v9  ;;  %v339_v26 = vmul.f32 %v731_v44, %v723_v41  ;;  %v438_v27 = vmul.f32 %v738_v49, %v744_v52  ;;  %v439_v33 = vmul.f32 %v767_v1, %v747_v53 }
  0x4b   :  { %v342_v36 = vadd.f32 %v338_v22, %v334_v30  ;;  %v459_v19 = vcombine.low %v436_v60, %v437_v23  ;;  %v242_v20 = vadd.f32 %v238_v58, %v134_v51  ;;  %v442_v43 = vmul.f32 %v760_v62, %v719_v40 }
  0x4c   :  { %v243_v34 = vadd.f32 %v239_v46, %v135_v25  ;;  %v343_v42 = vadd.f32 %v339_v26, %v335_v15  ;;  %v443_v39 = vmul.f32 %v763_v63, %v751_v54  ;;  %v128_v44 = vmul.f32 %v774_v37, %v643_v6 }
  0x4d   :  { %v129_v47 = vmul.f32 %v657_v11, %v777_v38  ;;  %463 = vst [vmem:[#allocation7 + $0x8] sm:$0xff] %v459_v19  ;;  %v346_v49 = vadd.f32 %v342_v36, %v242_v20  ;;  %v446_v45 = vadd.f32 %v442_v43, %v438_v27  ;;  %v132_v53 = vmul.f32 %v780_v4, %v641_v5  ;;  %v937_v4 = vld [vmem:[#allocation11_spill] sm:$0xff] }
  0x4e   :  { %v133_v2 = vmul.f32 %v783_v7, %v653_v10  ;;  %v347_v62 = vadd.f32 %v343_v42, %v243_v34  ;;  %v447_v3 = vadd.f32 %v443_v39, %v439_v33  ;;  %v232_v63 = vmul.f32 %v786_v16, %v661_v13  ;;  %v938_v16 = vld [vmem:[#allocation12_spill] sm:$0xff] }
  0x4f   :  { %v233_v6 = vmul.f32 %v675_v18, %v793_v50  ;;  %v450_v37 = vadd.f32 %v446_v45, %v346_v49  ;;  %v136_v51 = vadd.f32 %v132_v53, %v128_v44  ;;  %v236_v38 = vmul.f32 %v804_v61, %v659_v12 }
  0x50   :  { %v137_v11 = vadd.f32 %v133_v2, %v129_v47  ;;  %v451_v8 = vadd.f32 %v447_v3, %v347_v62  ;;  %v237_v5 = vmul.f32 %v807_v0, %v671_v17  ;;  %v336_v10 = vmul.f32 %v816_v21, %v705_v32 }
  0x51   :  { %v337_v7 = vmul.f32 %v735_v48, %v937_v4  ;;  %v240_v13 = vadd.f32 %v236_v38, %v232_v63  ;;  %v340_v18 = vmul.f32 %v938_v16, %v699_v29  ;;  %v341_v50 = vmul.f32 %v825_v28, %v723_v41 }
  0x52   :  { %v440_v12 = vmul.f32 %v828_v55, %v744_v52  ;;  %v468_v61 = vcombine.low %v450_v37, %v451_v8  ;;  %v241_v9 = vadd.f32 %v237_v5, %v233_v6  ;;  %v441_v17 = vmul.f32 %v767_v1, %v839_v57 }
  0x53   :  { %v444_v32 = vmul.f32 %v414_v35, %v719_v40  ;;  %v244_v0 = vadd.f32 %v240_v13, %v136_v51  ;;  %v344_v21 = vadd.f32 %v340_v18, %v336_v10  ;;  %v345_v48 = vadd.f32 %v341_v50, %v337_v7 }
  0x54   :  { %v445_v56 = vmul.f32 %v845_v31, %v751_v54  ;;  %473 = vst [vmem:[#allocation7 + $0x10] sm:$0xff] %v468_v61  ;;  %v245_v29 = vadd.f32 %v241_v9, %v137_v11 }
  0x55   :  { %v448_v59 = vadd.f32 %v444_v32, %v440_v12  ;;  %v348_v41 = vadd.f32 %v344_v21, %v244_v0 }
  0x56   :  { %v449_v28 = vadd.f32 %v445_v56, %v441_v17  ;;  %v349_v14 = vadd.f32 %v345_v48, %v245_v29 }
  0x57   :  { %v452_v52 = vadd.f32 %v448_v59, %v348_v41 }
  0x58   :  { %v453_v55 = vadd.f32 %v449_v28, %v349_v14 }
  0x5a   :  { %v469_v24 = vcombine.low %v452_v52, %v453_v55 }
  0x5c   :  { %474 = vst [vmem:[#allocation7 + $0x18] sm:$0xff] %v469_v24 }
  0x5d   :  { %571 = shalt.err (!%p568_p6)
}
  0x5e   :  { %s572_s12 = scalar_lea.hbm %s932_s2, 512 }
  0x5f   :  { %p573_p7 = scmp.ne.s32.totalorder %s932_s2, %s572_s12  ;;  %p576_p8 = scmp.lt.u32.totalorder %s572_s12, %s932_s2 }
  0x61   :  { %p578_p9 = pnand %p576_p8, %p573_p7 }
  0x63   :  { %581 = shalt.err (!%p578_p9)
}
  0x64   :  { %486 = dma.vmem_to_hbm [thread:$0]  %s481_s8, 512, %s932_s2, [#allocation4], %s592_s0, %s592_s0, %s593_s5  }
  0x65   :  { %586 = dma.done.wait [#allocation4], 512  }
  0x66   :  { %587 = vsyncadd [#allocation4], 4294966784 }
  0x67   :  { %490 = vsyncpa [#allocation3], 1 }
  0x68   :  { %491 = vsyncpa [#allocation6], 1 }
  0x69   :  { %492 = vsyncpa [#allocation4], 1 }

</bundles_post_ra>
